<compile_context>
chip_gen: v7x
topology: tpu7x:2x2x1
jax: 0.10.0
libtpu: 0.0.40
codegen_flags: <defaults>
</compile_context>

<pallas_src>
import math
import numpy as np
import jax
import jax.numpy as jnp
from jax import lax
from jax.experimental import pallas as pl
from jax.experimental.pallas import tpu as pltpu


# ---------------------------------------------------------------------------
# Shift-key bookkeeping shared between host (weight grouping) and kernel.
# A shifted slab is identified by (jy2, jx2, dly, dlx): source sub-grid
# (jy2, jx2) rolled by dly pooled rows / dlx pooled cols.  Only 16 exist.
# ---------------------------------------------------------------------------
_SHIFT_KEYS_1D = ((0, 0), (1, 0), (1, -1), (0, 1))       # (sub-grid comp, delta)


def _conv2_keys():
    return [(jy2, jx2, dly, dlx)
            for (jy2, dly) in _SHIFT_KEYS_1D
            for (jx2, dlx) in _SHIFT_KEYS_1D]


_MASK_IDX = {}
for _dly in (-1, 0, 1):
    for _dlx in (-1, 0, 1):
        if (_dly, _dlx) != (0, 0):
            _MASK_IDX[(_dly, _dlx)] = len(_MASK_IDX)      # 8 combined masks


def _round_up(v, m):
    return (v + m - 1) // m * m


def _pick_batch_block(n, p_pad, max_lanes=1024):
    """Images per grid step: lanes bounded, prefer >= 2 grid steps, never B=N fallback."""
    divs = [d for d in range(1, n + 1) if n % d == 0 and d * p_pad <= max_lanes]
    if not divs:
        # TODO(synk): for p_pad > max_lanes (very large images) a second grid
        # axis over pooled rows would need 3x3 halo handling; use B=1 for now.
        return 1
    multi = [d for d in divs if n // d >= 2]
    return max(multi) if multi else max(divs)


# ---------------------------------------------------------------------------
# Wrapper: layout glue + pallas_call.
# ---------------------------------------------------------------------------
def first_resblock_discriminator(x_nchw, w1, b1, w2, b2, wb, bb,
                                 *, compute_dtype=jnp.float32):
    """x_nchw: (N, Cin, H, W); conv weights OIHW (already spectral-normalized)."""
    N, Cin, H, W = x_nchw.shape
    Cout = w1.shape[0]
    assert H % 2 == 0 and W % 2 == 0
    hp, wp = H // 2, W // 2
    p = hp * wp
    p_pad = _round_up(p, 128)                 # lane-dense & 128-aligned per image

    cd = jnp.dtype(compute_dtype)
    csz = cd.itemsize
    sub = 8 if csz == 4 else 16               # f32 / bf16 sublane tile
    cin_p = _round_up(Cin, sub)
    cout_p = _round_up(Cout, sub)

    B = _pick_batch_block(N, p_pad)
    grid = N // B
    l2 = B * p_pad                            # lanes per grid step (mult of 128)

    # --- space-to-depth x: (N,Cin,H,W) -> (4, cin_p, N*p_pad), lane-dense -----
    # sub-grid j = (y%2)*2 + (x%2); lane = n*p_pad + yo*wp + xo (zeros past p).
    x_s2d = (x_nchw.reshape(N, Cin, hp, 2, wp, 2)
             .transpose(3, 5, 1, 0, 2, 4)                 # (2y, 2x, Cin, N, hp, wp)
             .reshape(4, Cin, N, p))
    x_s2d = jnp.pad(x_s2d, ((0, 0), (0, cin_p - Cin), (0, 0), (0, p_pad - p)))
    x_s2d = x_s2d.reshape(4, cin_p, N * p_pad).astype(cd)
    # TODO(synk): a full discriminator should keep this (4, C, lanes) layout
    # between adjacent blocks instead of re-doing NCHW<->lane transposes in HBM.

    # --- combined border masks, one per (dly,dlx), tiled over B images --------
    r = np.arange(p_pad)
    yo, xo = r // wp, r % wp
    inside = r < p

    def _valid(d, coord, size):
        if d == 0:
            return np.ones(p_pad, bool)
        return coord >= -d if d < 0 else coord <= size - 1 - d

    mrows = np.zeros((8, p_pad), np.float32)
    for (dly, dlx), idx in _MASK_IDX.items():
        mrows[idx] = (inside & _valid(dly, yo, hp) & _valid(dlx, xo, wp))
    masks = jnp.asarray(np.tile(mrows, (1, B)), cd)        # (8, l2)

    # --- weights: channel-padded, tap-major / channel-minor flattening --------
    w1f = jnp.transpose(w1, (0, 2, 3, 1))                  # (Cout, 3, 3, Cin)
    w1f = jnp.pad(w1f, ((0, cout_p - Cout), (0, 0), (0, 0), (0, cin_p - Cin)))
    w1f = w1f.reshape(cout_p, 9 * cin_p).astype(cd)

    # conv2 + AvgPool2d(2) fused: the pool sums the four sub-grid outputs, so
    # every (sub-grid, tap) pair that maps to the same shifted slab has its
    # weights pre-summed (and scaled by 1/4) on the host -> 16 matrices.
    w2g_list = []
    for (jy2, jx2, dly, dlx) in _conv2_keys():
        acc = jnp.zeros((Cout, Cout), jnp.float32)
        for jy in (0, 1):
            dy = 2 * dly + jy2 - jy
            if not -1 <= dy <= 1:
                continue
            for jx in (0, 1):
                dx = 2 * dlx + jx2 - jx
                if not -1 <= dx <= 1:
                    continue
                acc = acc + w2[:, :, dy + 1, dx + 1]
        acc = 0.25 * acc
        w2g_list.append(jnp.pad(acc, ((0, cout_p - Cout), (0, cout_p - Cout))))
    w2g = jnp.stack(w2g_list).astype(cd)                   # (16, cout_p, cout_p)

    wbf = jnp.pad(wb.reshape(Cout, Cin),
                  ((0, cout_p - Cout), (0, cin_p - Cin))).astype(cd)
    b1c = jnp.pad(b1, (0, cout_p - Cout)).reshape(cout_p, 1).astype(jnp.float32)
    boc = jnp.pad(b2 + bb, (0, cout_p - Cout)).reshape(cout_p, 1).astype(jnp.float32)

    # -------------------------- fused kernel ----------------------------------
    def kernel(x_ref, m_ref, w1_ref, b1_ref, w2g_ref, wb_ref, bo_ref, o_ref):
        m_all = m_ref[...]                                 # (8, l2), 0/1 masks
        x_slabs = [x_ref[j] for j in range(4)]             # (cin_p, l2) each

        def shift(slab, dly, dlx):
            # slab value at pooled location (yo+dly, xo+dlx); out-of-image and
            # padded lanes are zeroed by a single pre-combined mask multiply.
            delta = dly * wp + dlx
            v = slab
            if delta:
                v = pltpu.roll(v, (-delta) % l2, axis=1)
            if (dly, dlx) != (0, 0):
                i = _MASK_IDX[(dly, dlx)]
                v = v * m_all[i:i + 1, :]
            return v

        # conv1 (3x3, pad 1): single im2col matmul, K = 9*cin_p.  The 36 tap
        # references reuse the 16 deduped shifted slabs (12 rolls + 12 masks).
        memo1 = {}
        for (jy2, dly) in _SHIFT_KEYS_1D:
            for (jx2, dlx) in _SHIFT_KEYS_1D:
                memo1[(jy2, jx2, dly, dlx)] = shift(x_slabs[jy2 * 2 + jx2],
                                                    dly, dlx)
        taps = []
        for dy in (-1, 0, 1):
            for dx in (-1, 0, 1):
                cols = []
                for j in range(4):
                    jy, jx = j // 2, j % 2
                    dly, jy2 = divmod(jy + dy, 2)
                    dlx, jx2 = divmod(jx + dx, 2)
                    cols.append(memo1[(jy2, jx2, dly, dlx)])
                taps.append(jnp.concatenate(cols, axis=1))  # (cin_p, 4*l2)
        im1 = jnp.concatenate(taps, axis=0)                 # (9*cin_p, 4*l2)

        h1 = jnp.dot(w1_ref[...], im1, preferred_element_type=jnp.float32)
        h1 = jnp.maximum(h1 + b1_ref[...], 0.0).astype(cd)  # (cout_p, 4*l2)
        h1_slabs = [h1[:, j * l2:(j + 1) * l2] for j in range(4)]

        # bypass + combined bias seed the f32 accumulator: pool(x) -> 1x1 conv.
        xpool = (0.25 * (x_slabs[0] + x_slabs[1]
                         + x_slabs[2] + x_slabs[3])).astype(cd)
        acc = jnp.dot(wb_ref[...], xpool,
                      preferred_element_type=jnp.float32) + bo_ref[...]

        # conv2 + AvgPool2d(2): 16 grouped matmuls (K = cout_p), no im2col
        # buffer; each shifted slab is built once and consumed immediately.
        for k, (jy2, jx2, dly, dlx) in enumerate(_conv2_keys()):
            v = shift(h1_slabs[jy2 * 2 + jx2], dly, dlx)
            acc = acc + jnp.dot(w2g_ref[k], v,
                                preferred_element_type=jnp.float32)

        o_ref[...] = acc.astype(o_ref.dtype)

    # -------------------------- cost / VMEM sizing -----------------------------
    flops = (2 * cout_p * 9 * cin_p * 4 * N * p_pad        # conv1 im2col matmul
             + 2 * cout_p * cout_p * 16 * N * p_pad        # conv2+pool (grouped)
             + 2 * cout_p * cin_p * N * p_pad)             # bypass 1x1
    bytes_accessed = (4 * cin_p * N * p_pad * csz          # x
                      + 8 * l2 * csz                        # masks
                      + (cout_p * 9 * cin_p + 16 * cout_p * cout_p
                         + cout_p * cin_p) * csz            # weights
                      + 2 * cout_p * 4                      # biases
                      + cout_p * N * p_pad * 4)             # output

    vmem_est = (2 * (4 * cin_p * l2 * csz + cout_p * l2 * 4)   # dbl-buffered I/O
                + 8 * l2 * csz + 2 * cout_p * 4
                + (cout_p * 9 * cin_p + 16 * cout_p * cout_p
                   + cout_p * cin_p) * csz
                + 36 * cin_p * l2 * csz                        # conv1 im2col
                + 16 * cin_p * l2 * csz                        # conv1 memo slabs
                + cout_p * 4 * l2 * (4 + csz)                  # h1 (f32 + cd)
                + 4 * cout_p * l2 * 4)                         # acc + transients
    vmem_limit = int(min(64 << 20, max(32 << 20, int(vmem_est * 1.5))))

    out_flat = pl.pallas_call(
        kernel,
        out_shape=jax.ShapeDtypeStruct((cout_p, N * p_pad), jnp.float32),
        grid_spec=pltpu.PrefetchScalarGridSpec(
            num_scalar_prefetch=0,
            grid=(grid,),
            in_specs=[
                pl.BlockSpec((4, cin_p, l2), lambda i: (0, 0, i)),
                pl.BlockSpec((8, l2), lambda i: (0, 0)),
                pl.BlockSpec((cout_p, 9 * cin_p), lambda i: (0, 0)),
                pl.BlockSpec((cout_p, 1), lambda i: (0, 0)),
                pl.BlockSpec((16, cout_p, cout_p), lambda i: (0, 0, 0)),
                pl.BlockSpec((cout_p, cin_p), lambda i: (0, 0)),
                pl.BlockSpec((cout_p, 1), lambda i: (0, 0)),
            ],
            out_specs=pl.BlockSpec((cout_p, l2), lambda i: (0, i)),
        ),
        compiler_params=pltpu.CompilerParams(
            dimension_semantics=("parallel",),
            vmem_limit_bytes=vmem_limit),
        cost_estimate=pl.CostEstimate(flops=int(flops), transcendentals=0,
                                      bytes_accessed=int(bytes_accessed)),
    )(x_s2d, masks, w1f, b1c, w2g, wbf, boc)

    # (cout_p, N*p_pad) -> NCHW (drop channel / lane padding)
    out = out_flat.reshape(cout_p, N, p_pad)[:Cout, :, :p]
    return jnp.transpose(out.reshape(Cout, N, hp, wp), (1, 0, 2, 3))


# ---------------------------------------------------------------------------
# Deterministic parameter construction (matches nn.Module __init__ semantics).
# ---------------------------------------------------------------------------
def _xavier_uniform(key, shape_oihw, gain):
    o, i, kh, kw = shape_oihw
    fan_in, fan_out = i * kh * kw, o * kh * kw
    bound = gain * math.sqrt(6.0 / (fan_in + fan_out))
    return jax.random.uniform(key, shape_oihw, jnp.float32, -bound, bound)


def _conv_bias(key, out_ch, fan_in):
    bound = 1.0 / math.sqrt(fan_in)
    return jax.random.uniform(key, (out_ch,), jnp.float32, -bound, bound)


def _l2_normalize(v, eps=1e-12):
    return v / jnp.maximum(jnp.linalg.norm(v), eps)


def _spectral_norm(w_oihw, u, eps=1e-12):
    """One power iteration, as torch.nn.utils.spectral_norm does per forward."""
    w_mat = w_oihw.reshape(w_oihw.shape[0], -1)
    v = _l2_normalize(w_mat.T @ u, eps)
    u_new = _l2_normalize(w_mat @ v, eps)
    sigma = u_new @ (w_mat @ v)
    return w_oihw / sigma


# ---------------------------------------------------------------------------
# Pure-JAX reference (NCHW) for correctness check.
# ---------------------------------------------------------------------------
def _ref_forward(x, w1, b1, w2, b2, wb, bb):
    def conv(inp, w, b, pad):
        y = lax.conv_general_dilated(
            inp, w, (1, 1), [(pad, pad), (pad, pad)],
            dimension_numbers=("NCHW", "OIHW", "NCHW"))
        return y + b[None, :, None, None]

    def avgpool2(t):
        n, c, h, w = t.shape
        return t.reshape(n, c, h // 2, 2, w // 2, 2).mean(axis=(3, 5))

    h = jnp.maximum(conv(x, w1, b1, 1), 0.0)
    h = avgpool2(conv(h, w2, b2, 1))
    byp = conv(avgpool2(x), wb, bb, 0)
    return h + byp


# ---------------------------------------------------------------------------
if __name__ == "__main__":
    N, Cin, Cout, H, W = 2, 4, 8, 16, 16

    key = jax.random.PRNGKey(0)
    ks = jax.random.split(key, 10)

    x = jax.random.normal(ks[0], (N, Cin, H, W), jnp.float32)

    # conv weights: xavier_uniform with the module's gains (OIHW).
    w1 = _xavier_uniform(ks[1], (Cout, Cin, 3, 3), 1.0)
    w2 = _xavier_uniform(ks[2], (Cout, Cout, 3, 3), 1.0)
    wb = _xavier_uniform(ks[3], (Cout, Cin, 1, 1), math.sqrt(2.0))
    # conv biases keep nn.Conv2d default init (not spectrally normalized).
    b1 = _conv_bias(ks[4], Cout, Cin * 9)
    b2 = _conv_bias(ks[5], Cout, Cout * 9)
    bb = _conv_bias(ks[6], Cout, Cin * 1)

    # SpectralNorm `u` buffers: normal_(0,1) then normalized (deterministic).
    u1 = _l2_normalize(jax.random.normal(ks[7], (Cout,), jnp.float32))
    u2 = _l2_normalize(jax.random.normal(ks[8], (Cout,), jnp.float32))
    ub = _l2_normalize(jax.random.normal(ks[9], (Cout,), jnp.float32))

    w1_sn = _spectral_norm(w1, u1)
    w2_sn = _spectral_norm(w2, u2)
    wb_sn = _spectral_norm(wb, ub)

    # TODO(synk): on v6e/v7x pass compute_dtype=jnp.bfloat16 (loosen tolerance);
    # keep float32 on v5e (no bf16 VPU there).
    out = first_resblock_discriminator(x, w1_sn, b1, w2_sn, b2, wb_sn, bb)
    out = jax.block_until_ready(out)

    ref = _ref_forward(x, w1_sn, b1, w2_sn, b2, wb_sn, bb)
    assert out.shape == (N, Cout, H // 2, W // 2), out.shape
    np.testing.assert_allclose(np.asarray(out), np.asarray(ref),
                               rtol=1e-4, atol=1e-4)
    print("KERNEL_OK")
</pallas_src>

<mosaic_0001>
module attributes {stable_mosaic.version = 11 : i64} {
  func.func @kernel(%arg0: i32, %arg1: memref<4x8x128xf32, #tpu.memory_space<vmem>>, %arg2: memref<8x128xf32, #tpu.memory_space<vmem>>, %arg3: memref<8x72xf32, #tpu.memory_space<vmem>>, %arg4: memref<8x1xf32, #tpu.memory_space<vmem>>, %arg5: memref<16x8x8xf32, #tpu.memory_space<vmem>>, %arg6: memref<8x8xf32, #tpu.memory_space<vmem>>, %arg7: memref<8x1xf32, #tpu.memory_space<vmem>>, %arg8: memref<8x128xf32, #tpu.memory_space<vmem>>) attributes {dimension_semantics = [#tpu.dimension_semantics<parallel>], iteration_bounds = array<i64: 2>, scalar_prefetch = 0 : i64, scratch_operands = 0 : i64, tpu.core_type = #tpu.core_type<tc>, window_params = [{transform_indices = @transform_0, window_bounds = array<i64: 4, 8, 128>}, {pipeline_mode = #tpu.pipeline_mode<synchronous>, transform_indices = @transform_1, window_bounds = array<i64: 8, 128>}, {pipeline_mode = #tpu.pipeline_mode<synchronous>, transform_indices = @transform_2, window_bounds = array<i64: 8, 72>}, {pipeline_mode = #tpu.pipeline_mode<synchronous>, transform_indices = @transform_3, window_bounds = array<i64: 8, 1>}, {pipeline_mode = #tpu.pipeline_mode<synchronous>, transform_indices = @transform_4, window_bounds = array<i64: 16, 8, 8>}, {pipeline_mode = #tpu.pipeline_mode<synchronous>, transform_indices = @transform_5, window_bounds = array<i64: 8, 8>}, {pipeline_mode = #tpu.pipeline_mode<synchronous>, transform_indices = @transform_6, window_bounds = array<i64: 8, 1>}, {transform_indices = @transform_7, window_bounds = array<i64: 8, 128>}]} {
    %c0 = arith.constant 0 : index
    %c0_0 = arith.constant 0 : index
    %0 = vector.load %arg2[%c0, %c0_0] : memref<8x128xf32, #tpu.memory_space<vmem>>, vector<8x128xf32>
    %c0_1 = arith.constant 0 : index
    %c0_2 = arith.constant 0 : index
    %c0_3 = arith.constant 0 : index
    %1 = vector.load %arg1[%c0_1, %c0_2, %c0_3] : memref<4x8x128xf32, #tpu.memory_space<vmem>>, vector<1x8x128xf32>
    %2 = vector.shape_cast %1 : vector<1x8x128xf32> to vector<8x128xf32>
    %c1 = arith.constant 1 : index
    %c0_4 = arith.constant 0 : index
    %c0_5 = arith.constant 0 : index
    %3 = vector.load %arg1[%c1, %c0_4, %c0_5] : memref<4x8x128xf32, #tpu.memory_space<vmem>>, vector<1x8x128xf32>
    %4 = vector.shape_cast %3 : vector<1x8x128xf32> to vector<8x128xf32>
    %c2 = arith.constant 2 : index
    %c0_6 = arith.constant 0 : index
    %c0_7 = arith.constant 0 : index
    %5 = vector.load %arg1[%c2, %c0_6, %c0_7] : memref<4x8x128xf32, #tpu.memory_space<vmem>>, vector<1x8x128xf32>
    %6 = vector.shape_cast %5 : vector<1x8x128xf32> to vector<8x128xf32>
    %c3 = arith.constant 3 : index
    %c0_8 = arith.constant 0 : index
    %c0_9 = arith.constant 0 : index
    %7 = vector.load %arg1[%c3, %c0_8, %c0_9] : memref<4x8x128xf32, #tpu.memory_space<vmem>>, vector<1x8x128xf32>
    %8 = vector.shape_cast %7 : vector<1x8x128xf32> to vector<8x128xf32>
    %c1_i32 = arith.constant 1 : i32
    %9 = tpu.dynamic_rotate %4 by %c1_i32 dim 1 : vector<8x128xf32>, i32 -> vector<8x128xf32>
    %10 = vector.extract_strided_slice %0 {offsets = [3, 0], sizes = [1, 128], strides = [1, 1]} : vector<8x128xf32> to vector<1x128xf32>
    %11 = vector.broadcast %10 : vector<1x128xf32> to vector<8x128xf32>
    %12 = arith.mulf %9, %11 : vector<8x128xf32>
    %c127_i32 = arith.constant 127 : i32
    %13 = tpu.dynamic_rotate %2 by %c127_i32 dim 1 : vector<8x128xf32>, i32 -> vector<8x128xf32>
    %14 = vector.extract_strided_slice %0 {offsets = [4, 0], sizes = [1, 128], strides = [1, 1]} : vector<8x128xf32> to vector<1x128xf32>
    %15 = vector.broadcast %14 : vector<1x128xf32> to vector<8x128xf32>
    %16 = arith.mulf %13, %15 : vector<8x128xf32>
    %c1_i32_10 = arith.constant 1 : i32
    %17 = tpu.dynamic_rotate %8 by %c1_i32_10 dim 1 : vector<8x128xf32>, i32 -> vector<8x128xf32>
    %18 = vector.extract_strided_slice %0 {offsets = [3, 0], sizes = [1, 128], strides = [1, 1]} : vector<8x128xf32> to vector<1x128xf32>
    %19 = vector.broadcast %18 : vector<1x128xf32> to vector<8x128xf32>
    %20 = arith.mulf %17, %19 : vector<8x128xf32>
    %c127_i32_11 = arith.constant 127 : i32
    %21 = tpu.dynamic_rotate %6 by %c127_i32_11 dim 1 : vector<8x128xf32>, i32 -> vector<8x128xf32>
    %22 = vector.extract_strided_slice %0 {offsets = [4, 0], sizes = [1, 128], strides = [1, 1]} : vector<8x128xf32> to vector<1x128xf32>
    %23 = vector.broadcast %22 : vector<1x128xf32> to vector<8x128xf32>
    %24 = arith.mulf %21, %23 : vector<8x128xf32>
    %c8_i32 = arith.constant 8 : i32
    %25 = tpu.dynamic_rotate %6 by %c8_i32 dim 1 : vector<8x128xf32>, i32 -> vector<8x128xf32>
    %26 = vector.extract_strided_slice %0 {offsets = [1, 0], sizes = [1, 128], strides = [1, 1]} : vector<8x128xf32> to vector<1x128xf32>
    %27 = vector.broadcast %26 : vector<1x128xf32> to vector<8x128xf32>
    %28 = arith.mulf %25, %27 : vector<8x128xf32>
    %c8_i32_12 = arith.constant 8 : i32
    %29 = tpu.dynamic_rotate %8 by %c8_i32_12 dim 1 : vector<8x128xf32>, i32 -> vector<8x128xf32>
    %30 = vector.extract_strided_slice %0 {offsets = [1, 0], sizes = [1, 128], strides = [1, 1]} : vector<8x128xf32> to vector<1x128xf32>
    %31 = vector.broadcast %30 : vector<1x128xf32> to vector<8x128xf32>
    %32 = arith.mulf %29, %31 : vector<8x128xf32>
    %c9_i32 = arith.constant 9 : i32
    %33 = tpu.dynamic_rotate %8 by %c9_i32 dim 1 : vector<8x128xf32>, i32 -> vector<8x128xf32>
    %34 = vector.extract_strided_slice %0 {offsets = [0, 0], sizes = [1, 128], strides = [1, 1]} : vector<8x128xf32> to vector<1x128xf32>
    %35 = vector.broadcast %34 : vector<1x128xf32> to vector<8x128xf32>
    %36 = arith.mulf %33, %35 : vector<8x128xf32>
    %c7_i32 = arith.constant 7 : i32
    %37 = tpu.dynamic_rotate %6 by %c7_i32 dim 1 : vector<8x128xf32>, i32 -> vector<8x128xf32>
    %38 = vector.extract_strided_slice %0 {offsets = [2, 0], sizes = [1, 128], strides = [1, 1]} : vector<8x128xf32> to vector<1x128xf32>
    %39 = vector.broadcast %38 : vector<1x128xf32> to vector<8x128xf32>
    %40 = arith.mulf %37, %39 : vector<8x128xf32>
    %c120_i32 = arith.constant 120 : i32
    %41 = tpu.dynamic_rotate %2 by %c120_i32 dim 1 : vector<8x128xf32>, i32 -> vector<8x128xf32>
    %42 = vector.extract_strided_slice %0 {offsets = [6, 0], sizes = [1, 128], strides = [1, 1]} : vector<8x128xf32> to vector<1x128xf32>
    %43 = vector.broadcast %42 : vector<1x128xf32> to vector<8x128xf32>
    %44 = arith.mulf %41, %43 : vector<8x128xf32>
    %c120_i32_13 = arith.constant 120 : i32
    %45 = tpu.dynamic_rotate %4 by %c120_i32_13 dim 1 : vector<8x128xf32>, i32 -> vector<8x128xf32>
    %46 = vector.extract_strided_slice %0 {offsets = [6, 0], sizes = [1, 128], strides = [1, 1]} : vector<8x128xf32> to vector<1x128xf32>
    %47 = vector.broadcast %46 : vector<1x128xf32> to vector<8x128xf32>
    %48 = arith.mulf %45, %47 : vector<8x128xf32>
    %c121_i32 = arith.constant 121 : i32
    %49 = tpu.dynamic_rotate %4 by %c121_i32 dim 1 : vector<8x128xf32>, i32 -> vector<8x128xf32>
    %50 = vector.extract_strided_slice %0 {offsets = [5, 0], sizes = [1, 128], strides = [1, 1]} : vector<8x128xf32> to vector<1x128xf32>
    %51 = vector.broadcast %50 : vector<1x128xf32> to vector<8x128xf32>
    %52 = arith.mulf %49, %51 : vector<8x128xf32>
    %c119_i32 = arith.constant 119 : i32
    %53 = tpu.dynamic_rotate %2 by %c119_i32 dim 1 : vector<8x128xf32>, i32 -> vector<8x128xf32>
    %54 = vector.extract_strided_slice %0 {offsets = [7, 0], sizes = [1, 128], strides = [1, 1]} : vector<8x128xf32> to vector<1x128xf32>
    %55 = vector.broadcast %54 : vector<1x128xf32> to vector<8x128xf32>
    %56 = arith.mulf %53, %55 : vector<8x128xf32>
    %57 = tpu.concatenate %36, %28, %12, %2 in 1 : vector<8x128xf32>, vector<8x128xf32>, vector<8x128xf32>, vector<8x128xf32> -> vector<8x512xf32>
    %58 = tpu.concatenate %28, %32, %2, %4 in 1 : vector<8x128xf32>, vector<8x128xf32>, vector<8x128xf32>, vector<8x128xf32> -> vector<8x512xf32>
    %59 = tpu.concatenate %32, %40, %4, %16 in 1 : vector<8x128xf32>, vector<8x128xf32>, vector<8x128xf32>, vector<8x128xf32> -> vector<8x512xf32>
    %60 = tpu.concatenate %12, %2, %20, %6 in 1 : vector<8x128xf32>, vector<8x128xf32>, vector<8x128xf32>, vector<8x128xf32> -> vector<8x512xf32>
    %61 = tpu.concatenate %2, %4, %6, %8 in 1 : vector<8x128xf32>, vector<8x128xf32>, vector<8x128xf32>, vector<8x128xf32> -> vector<8x512xf32>
    %62 = tpu.concatenate %4, %16, %8, %24 in 1 : vector<8x128xf32>, vector<8x128xf32>, vector<8x128xf32>, vector<8x128xf32> -> vector<8x512xf32>
    %63 = tpu.concatenate %20, %6, %52, %44 in 1 : vector<8x128xf32>, vector<8x128xf32>, vector<8x128xf32>, vector<8x128xf32> -> vector<8x512xf32>
    %64 = tpu.concatenate %6, %8, %44, %48 in 1 : vector<8x128xf32>, vector<8x128xf32>, vector<8x128xf32>, vector<8x128xf32> -> vector<8x512xf32>
    %65 = tpu.concatenate %8, %24, %48, %56 in 1 : vector<8x128xf32>, vector<8x128xf32>, vector<8x128xf32>, vector<8x128xf32> -> vector<8x512xf32>
    %66 = tpu.concatenate %57, %58, %59, %60, %61, %62, %63, %64, %65 in 0 : vector<8x512xf32>, vector<8x512xf32>, vector<8x512xf32>, vector<8x512xf32>, vector<8x512xf32>, vector<8x512xf32>, vector<8x512xf32>, vector<8x512xf32>, vector<8x512xf32> -> vector<72x512xf32>
    %c0_14 = arith.constant 0 : index
    %c0_15 = arith.constant 0 : index
    %67 = vector.load %arg3[%c0_14, %c0_15] : memref<8x72xf32, #tpu.memory_space<vmem>>, vector<8x72xf32>
    %cst = arith.constant dense<0.000000e+00> : vector<8x512xf32>
    %68 = tpu.matmul %67, %66, %cst {dimension_numbers = #tpu.dot_dimension_numbers<[1], [0], [0], [1], [0, 0, 1, 1], [], []>} : vector<8x72xf32>, vector<72x512xf32>, vector<8x512xf32> -> vector<8x512xf32>
    %c0_16 = arith.constant 0 : index
    %c0_17 = arith.constant 0 : index
    %69 = vector.load %arg4[%c0_16, %c0_17] : memref<8x1xf32, #tpu.memory_space<vmem>>, vector<8x1xf32>
    %70 = vector.broadcast %69 : vector<8x1xf32> to vector<8x512xf32>
    %71 = arith.addf %68, %70 : vector<8x512xf32>
    %cst_18 = arith.constant 0.000000e+00 : f32
    %72 = vector.broadcast %cst_18 : f32 to vector<8x512xf32>
    %73 = arith.maximumf %71, %72 : vector<8x512xf32>
    %74 = vector.extract_strided_slice %73 {offsets = [0, 0], sizes = [8, 128], strides = [1, 1]} : vector<8x512xf32> to vector<8x128xf32>
    %75 = vector.extract_strided_slice %73 {offsets = [0, 128], sizes = [8, 128], strides = [1, 1]} : vector<8x512xf32> to vector<8x128xf32>
    %76 = vector.extract_strided_slice %73 {offsets = [0, 256], sizes = [8, 128], strides = [1, 1]} : vector<8x512xf32> to vector<8x128xf32>
    %77 = vector.extract_strided_slice %73 {offsets = [0, 384], sizes = [8, 128], strides = [1, 1]} : vector<8x512xf32> to vector<8x128xf32>
    %78 = arith.addf %2, %4 : vector<8x128xf32>
    %79 = arith.addf %78, %6 : vector<8x128xf32>
    %80 = arith.addf %79, %8 : vector<8x128xf32>
    %cst_19 = arith.constant 2.500000e-01 : f32
    %81 = vector.broadcast %cst_19 : f32 to vector<8x128xf32>
    %82 = arith.mulf %81, %80 : vector<8x128xf32>
    %c0_20 = arith.constant 0 : index
    %c0_21 = arith.constant 0 : index
    %83 = vector.load %arg6[%c0_20, %c0_21] : memref<8x8xf32, #tpu.memory_space<vmem>>, vector<8x8xf32>
    %cst_22 = arith.constant dense<0.000000e+00> : vector<8x128xf32>
    %84 = tpu.matmul %83, %82, %cst_22 {dimension_numbers = #tpu.dot_dimension_numbers<[1], [0], [0], [1], [0, 0, 1, 1], [], []>} : vector<8x8xf32>, vector<8x128xf32>, vector<8x128xf32> -> vector<8x128xf32>
    %c0_23 = arith.constant 0 : index
    %c0_24 = arith.constant 0 : index
    %85 = vector.load %arg7[%c0_23, %c0_24] : memref<8x1xf32, #tpu.memory_space<vmem>>, vector<8x1xf32>
    %86 = vector.broadcast %85 : vector<8x1xf32> to vector<8x128xf32>
    %87 = arith.addf %84, %86 : vector<8x128xf32>
    %c0_25 = arith.constant 0 : index
    %c0_26 = arith.constant 0 : index
    %c0_27 = arith.constant 0 : index
    %88 = vector.load %arg5[%c0_25, %c0_26, %c0_27] : memref<16x8x8xf32, #tpu.memory_space<vmem>>, vector<1x8x8xf32>
    %89 = vector.shape_cast %88 : vector<1x8x8xf32> to vector<8x8xf32>
    %cst_28 = arith.constant dense<0.000000e+00> : vector<8x128xf32>
    %90 = tpu.matmul %89, %74, %cst_28 {dimension_numbers = #tpu.dot_dimension_numbers<[1], [0], [0], [1], [0, 0, 1, 1], [], []>} : vector<8x8xf32>, vector<8x128xf32>, vector<8x128xf32> -> vector<8x128xf32>
    %91 = arith.addf %87, %90 : vector<8x128xf32>
    %c1_29 = arith.constant 1 : index
    %c0_30 = arith.constant 0 : index
    %c0_31 = arith.constant 0 : index
    %92 = vector.load %arg5[%c1_29, %c0_30, %c0_31] : memref<16x8x8xf32, #tpu.memory_space<vmem>>, vector<1x8x8xf32>
    %93 = vector.shape_cast %92 : vector<1x8x8xf32> to vector<8x8xf32>
    %cst_32 = arith.constant dense<0.000000e+00> : vector<8x128xf32>
    %94 = tpu.matmul %93, %75, %cst_32 {dimension_numbers = #tpu.dot_dimension_numbers<[1], [0], [0], [1], [0, 0, 1, 1], [], []>} : vector<8x8xf32>, vector<8x128xf32>, vector<8x128xf32> -> vector<8x128xf32>
    %95 = arith.addf %91, %94 : vector<8x128xf32>
    %c1_i32_33 = arith.constant 1 : i32
    %96 = tpu.dynamic_rotate %75 by %c1_i32_33 dim 1 : vector<8x128xf32>, i32 -> vector<8x128xf32>
    %97 = vector.extract_strided_slice %0 {offsets = [3, 0], sizes = [1, 128], strides = [1, 1]} : vector<8x128xf32> to vector<1x128xf32>
    %98 = vector.broadcast %97 : vector<1x128xf32> to vector<8x128xf32>
    %99 = arith.mulf %96, %98 : vector<8x128xf32>
    %c2_34 = arith.constant 2 : index
    %c0_35 = arith.constant 0 : index
    %c0_36 = arith.constant 0 : index
    %100 = vector.load %arg5[%c2_34, %c0_35, %c0_36] : memref<16x8x8xf32, #tpu.memory_space<vmem>>, vector<1x8x8xf32>
    %101 = vector.shape_cast %100 : vector<1x8x8xf32> to vector<8x8xf32>
    %cst_37 = arith.constant dense<0.000000e+00> : vector<8x128xf32>
    %102 = tpu.matmul %101, %99, %cst_37 {dimension_numbers = #tpu.dot_dimension_numbers<[1], [0], [0], [1], [0, 0, 1, 1], [], []>} : vector<8x8xf32>, vector<8x128xf32>, vector<8x128xf32> -> vector<8x128xf32>
    %103 = arith.addf %95, %102 : vector<8x128xf32>
    %c127_i32_38 = arith.constant 127 : i32
    %104 = tpu.dynamic_rotate %74 by %c127_i32_38 dim 1 : vector<8x128xf32>, i32 -> vector<8x128xf32>
    %105 = vector.extract_strided_slice %0 {offsets = [4, 0], sizes = [1, 128], strides = [1, 1]} : vector<8x128xf32> to vector<1x128xf32>
    %106 = vector.broadcast %105 : vector<1x128xf32> to vector<8x128xf32>
    %107 = arith.mulf %104, %106 : vector<8x128xf32>
    %c3_39 = arith.constant 3 : index
    %c0_40 = arith.constant 0 : index
    %c0_41 = arith.constant 0 : index
    %108 = vector.load %arg5[%c3_39, %c0_40, %c0_41] : memref<16x8x8xf32, #tpu.memory_space<vmem>>, vector<1x8x8xf32>
    %109 = vector.shape_cast %108 : vector<1x8x8xf32> to vector<8x8xf32>
    %cst_42 = arith.constant dense<0.000000e+00> : vector<8x128xf32>
    %110 = tpu.matmul %109, %107, %cst_42 {dimension_numbers = #tpu.dot_dimension_numbers<[1], [0], [0], [1], [0, 0, 1, 1], [], []>} : vector<8x8xf32>, vector<8x128xf32>, vector<8x128xf32> -> vector<8x128xf32>
    %111 = arith.addf %103, %110 : vector<8x128xf32>
    %c4 = arith.constant 4 : index
    %c0_43 = arith.constant 0 : index
    %c0_44 = arith.constant 0 : index
    %112 = vector.load %arg5[%c4, %c0_43, %c0_44] : memref<16x8x8xf32, #tpu.memory_space<vmem>>, vector<1x8x8xf32>
    %113 = vector.shape_cast %112 : vector<1x8x8xf32> to vector<8x8xf32>
    %cst_45 = arith.constant dense<0.000000e+00> : vector<8x128xf32>
    %114 = tpu.matmul %113, %76, %cst_45 {dimension_numbers = #tpu.dot_dimension_numbers<[1], [0], [0], [1], [0, 0, 1, 1], [], []>} : vector<8x8xf32>, vector<8x128xf32>, vector<8x128xf32> -> vector<8x128xf32>
    %115 = arith.addf %111, %114 : vector<8x128xf32>
    %c5 = arith.constant 5 : index
    %c0_46 = arith.constant 0 : index
    %c0_47 = arith.constant 0 : index
    %116 = vector.load %arg5[%c5, %c0_46, %c0_47] : memref<16x8x8xf32, #tpu.memory_space<vmem>>, vector<1x8x8xf32>
    %117 = vector.shape_cast %116 : vector<1x8x8xf32> to vector<8x8xf32>
    %cst_48 = arith.constant dense<0.000000e+00> : vector<8x128xf32>
    %118 = tpu.matmul %117, %77, %cst_48 {dimension_numbers = #tpu.dot_dimension_numbers<[1], [0], [0], [1], [0, 0, 1, 1], [], []>} : vector<8x8xf32>, vector<8x128xf32>, vector<8x128xf32> -> vector<8x128xf32>
    %119 = arith.addf %115, %118 : vector<8x128xf32>
    %c1_i32_49 = arith.constant 1 : i32
    %120 = tpu.dynamic_rotate %77 by %c1_i32_49 dim 1 : vector<8x128xf32>, i32 -> vector<8x128xf32>
    %121 = vector.extract_strided_slice %0 {offsets = [3, 0], sizes = [1, 128], strides = [1, 1]} : vector<8x128xf32> to vector<1x128xf32>
    %122 = vector.broadcast %121 : vector<1x128xf32> to vector<8x128xf32>
    %123 = arith.mulf %120, %122 : vector<8x128xf32>
    %c6 = arith.constant 6 : index
    %c0_50 = arith.constant 0 : index
    %c0_51 = arith.constant 0 : index
    %124 = vector.load %arg5[%c6, %c0_50, %c0_51] : memref<16x8x8xf32, #tpu.memory_space<vmem>>, vector<1x8x8xf32>
    %125 = vector.shape_cast %124 : vector<1x8x8xf32> to vector<8x8xf32>
    %cst_52 = arith.constant dense<0.000000e+00> : vector<8x128xf32>
    %126 = tpu.matmul %125, %123, %cst_52 {dimension_numbers = #tpu.dot_dimension_numbers<[1], [0], [0], [1], [0, 0, 1, 1], [], []>} : vector<8x8xf32>, vector<8x128xf32>, vector<8x128xf32> -> vector<8x128xf32>
    %127 = arith.addf %119, %126 : vector<8x128xf32>
    %c127_i32_53 = arith.constant 127 : i32
    %128 = tpu.dynamic_rotate %76 by %c127_i32_53 dim 1 : vector<8x128xf32>, i32 -> vector<8x128xf32>
    %129 = vector.extract_strided_slice %0 {offsets = [4, 0], sizes = [1, 128], strides = [1, 1]} : vector<8x128xf32> to vector<1x128xf32>
    %130 = vector.broadcast %129 : vector<1x128xf32> to vector<8x128xf32>
    %131 = arith.mulf %128, %130 : vector<8x128xf32>
    %c7 = arith.constant 7 : index
    %c0_54 = arith.constant 0 : index
    %c0_55 = arith.constant 0 : index
    %132 = vector.load %arg5[%c7, %c0_54, %c0_55] : memref<16x8x8xf32, #tpu.memory_space<vmem>>, vector<1x8x8xf32>
    %133 = vector.shape_cast %132 : vector<1x8x8xf32> to vector<8x8xf32>
    %cst_56 = arith.constant dense<0.000000e+00> : vector<8x128xf32>
    %134 = tpu.matmul %133, %131, %cst_56 {dimension_numbers = #tpu.dot_dimension_numbers<[1], [0], [0], [1], [0, 0, 1, 1], [], []>} : vector<8x8xf32>, vector<8x128xf32>, vector<8x128xf32> -> vector<8x128xf32>
    %135 = arith.addf %127, %134 : vector<8x128xf32>
    %c8_i32_57 = arith.constant 8 : i32
    %136 = tpu.dynamic_rotate %76 by %c8_i32_57 dim 1 : vector<8x128xf32>, i32 -> vector<8x128xf32>
    %137 = vector.extract_strided_slice %0 {offsets = [1, 0], sizes = [1, 128], strides = [1, 1]} : vector<8x128xf32> to vector<1x128xf32>
    %138 = vector.broadcast %137 : vector<1x128xf32> to vector<8x128xf32>
    %139 = arith.mulf %136, %138 : vector<8x128xf32>
    %c8 = arith.constant 8 : index
    %c0_58 = arith.constant 0 : index
    %c0_59 = arith.constant 0 : index
    %140 = vector.load %arg5[%c8, %c0_58, %c0_59] : memref<16x8x8xf32, #tpu.memory_space<vmem>>, vector<1x8x8xf32>
    %141 = vector.shape_cast %140 : vector<1x8x8xf32> to vector<8x8xf32>
    %cst_60 = arith.constant dense<0.000000e+00> : vector<8x128xf32>
    %142 = tpu.matmul %141, %139, %cst_60 {dimension_numbers = #tpu.dot_dimension_numbers<[1], [0], [0], [1], [0, 0, 1, 1], [], []>} : vector<8x8xf32>, vector<8x128xf32>, vector<8x128xf32> -> vector<8x128xf32>
    %143 = arith.addf %135, %142 : vector<8x128xf32>
    %c8_i32_61 = arith.constant 8 : i32
    %144 = tpu.dynamic_rotate %77 by %c8_i32_61 dim 1 : vector<8x128xf32>, i32 -> vector<8x128xf32>
    %145 = vector.extract_strided_slice %0 {offsets = [1, 0], sizes = [1, 128], strides = [1, 1]} : vector<8x128xf32> to vector<1x128xf32>
    %146 = vector.broadcast %145 : vector<1x128xf32> to vector<8x128xf32>
    %147 = arith.mulf %144, %146 : vector<8x128xf32>
    %c9 = arith.constant 9 : index
    %c0_62 = arith.constant 0 : index
    %c0_63 = arith.constant 0 : index
    %148 = vector.load %arg5[%c9, %c0_62, %c0_63] : memref<16x8x8xf32, #tpu.memory_space<vmem>>, vector<1x8x8xf32>
    %149 = vector.shape_cast %148 : vector<1x8x8xf32> to vector<8x8xf32>
    %cst_64 = arith.constant dense<0.000000e+00> : vector<8x128xf32>
    %150 = tpu.matmul %149, %147, %cst_64 {dimension_numbers = #tpu.dot_dimension_numbers<[1], [0], [0], [1], [0, 0, 1, 1], [], []>} : vector<8x8xf32>, vector<8x128xf32>, vector<8x128xf32> -> vector<8x128xf32>
    %151 = arith.addf %143, %150 : vector<8x128xf32>
    %c9_i32_65 = arith.constant 9 : i32
    %152 = tpu.dynamic_rotate %77 by %c9_i32_65 dim 1 : vector<8x128xf32>, i32 -> vector<8x128xf32>
    %153 = vector.extract_strided_slice %0 {offsets = [0, 0], sizes = [1, 128], strides = [1, 1]} : vector<8x128xf32> to vector<1x128xf32>
    %154 = vector.broadcast %153 : vector<1x128xf32> to vector<8x128xf32>
    %155 = arith.mulf %152, %154 : vector<8x128xf32>
    %c10 = arith.constant 10 : index
    %c0_66 = arith.constant 0 : index
    %c0_67 = arith.constant 0 : index
    %156 = vector.load %arg5[%c10, %c0_66, %c0_67] : memref<16x8x8xf32, #tpu.memory_space<vmem>>, vector<1x8x8xf32>
    %157 = vector.shape_cast %156 : vector<1x8x8xf32> to vector<8x8xf32>
    %cst_68 = arith.constant dense<0.000000e+00> : vector<8x128xf32>
    %158 = tpu.matmul %157, %155, %cst_68 {dimension_numbers = #tpu.dot_dimension_numbers<[1], [0], [0], [1], [0, 0, 1, 1], [], []>} : vector<8x8xf32>, vector<8x128xf32>, vector<8x128xf32> -> vector<8x128xf32>
    %159 = arith.addf %151, %158 : vector<8x128xf32>
    %c7_i32_69 = arith.constant 7 : i32
    %160 = tpu.dynamic_rotate %76 by %c7_i32_69 dim 1 : vector<8x128xf32>, i32 -> vector<8x128xf32>
    %161 = vector.extract_strided_slice %0 {offsets = [2, 0], sizes = [1, 128], strides = [1, 1]} : vector<8x128xf32> to vector<1x128xf32>
    %162 = vector.broadcast %161 : vector<1x128xf32> to vector<8x128xf32>
    %163 = arith.mulf %160, %162 : vector<8x128xf32>
    %c11 = arith.constant 11 : index
    %c0_70 = arith.constant 0 : index
    %c0_71 = arith.constant 0 : index
    %164 = vector.load %arg5[%c11, %c0_70, %c0_71] : memref<16x8x8xf32, #tpu.memory_space<vmem>>, vector<1x8x8xf32>
    %165 = vector.shape_cast %164 : vector<1x8x8xf32> to vector<8x8xf32>
    %cst_72 = arith.constant dense<0.000000e+00> : vector<8x128xf32>
    %166 = tpu.matmul %165, %163, %cst_72 {dimension_numbers = #tpu.dot_dimension_numbers<[1], [0], [0], [1], [0, 0, 1, 1], [], []>} : vector<8x8xf32>, vector<8x128xf32>, vector<8x128xf32> -> vector<8x128xf32>
    %167 = arith.addf %159, %166 : vector<8x128xf32>
    %c120_i32_73 = arith.constant 120 : i32
    %168 = tpu.dynamic_rotate %74 by %c120_i32_73 dim 1 : vector<8x128xf32>, i32 -> vector<8x128xf32>
    %169 = vector.extract_strided_slice %0 {offsets = [6, 0], sizes = [1, 128], strides = [1, 1]} : vector<8x128xf32> to vector<1x128xf32>
    %170 = vector.broadcast %169 : vector<1x128xf32> to vector<8x128xf32>
    %171 = arith.mulf %168, %170 : vector<8x128xf32>
    %c12 = arith.constant 12 : index
    %c0_74 = arith.constant 0 : index
    %c0_75 = arith.constant 0 : index
    %172 = vector.load %arg5[%c12, %c0_74, %c0_75] : memref<16x8x8xf32, #tpu.memory_space<vmem>>, vector<1x8x8xf32>
    %173 = vector.shape_cast %172 : vector<1x8x8xf32> to vector<8x8xf32>
    %cst_76 = arith.constant dense<0.000000e+00> : vector<8x128xf32>
    %174 = tpu.matmul %173, %171, %cst_76 {dimension_numbers = #tpu.dot_dimension_numbers<[1], [0], [0], [1], [0, 0, 1, 1], [], []>} : vector<8x8xf32>, vector<8x128xf32>, vector<8x128xf32> -> vector<8x128xf32>
    %175 = arith.addf %167, %174 : vector<8x128xf32>
    %c120_i32_77 = arith.constant 120 : i32
    %176 = tpu.dynamic_rotate %75 by %c120_i32_77 dim 1 : vector<8x128xf32>, i32 -> vector<8x128xf32>
    %177 = vector.extract_strided_slice %0 {offsets = [6, 0], sizes = [1, 128], strides = [1, 1]} : vector<8x128xf32> to vector<1x128xf32>
    %178 = vector.broadcast %177 : vector<1x128xf32> to vector<8x128xf32>
    %179 = arith.mulf %176, %178 : vector<8x128xf32>
    %c13 = arith.constant 13 : index
    %c0_78 = arith.constant 0 : index
    %c0_79 = arith.constant 0 : index
    %180 = vector.load %arg5[%c13, %c0_78, %c0_79] : memref<16x8x8xf32, #tpu.memory_space<vmem>>, vector<1x8x8xf32>
    %181 = vector.shape_cast %180 : vector<1x8x8xf32> to vector<8x8xf32>
    %cst_80 = arith.constant dense<0.000000e+00> : vector<8x128xf32>
    %182 = tpu.matmul %181, %179, %cst_80 {dimension_numbers = #tpu.dot_dimension_numbers<[1], [0], [0], [1], [0, 0, 1, 1], [], []>} : vector<8x8xf32>, vector<8x128xf32>, vector<8x128xf32> -> vector<8x128xf32>
    %183 = arith.addf %175, %182 : vector<8x128xf32>
    %c121_i32_81 = arith.constant 121 : i32
    %184 = tpu.dynamic_rotate %75 by %c121_i32_81 dim 1 : vector<8x128xf32>, i32 -> vector<8x128xf32>
    %185 = vector.extract_strided_slice %0 {offsets = [5, 0], sizes = [1, 128], strides = [1, 1]} : vector<8x128xf32> to vector<1x128xf32>
    %186 = vector.broadcast %185 : vector<1x128xf32> to vector<8x128xf32>
    %187 = arith.mulf %184, %186 : vector<8x128xf32>
    %c14 = arith.constant 14 : index
    %c0_82 = arith.constant 0 : index
    %c0_83 = arith.constant 0 : index
    %188 = vector.load %arg5[%c14, %c0_82, %c0_83] : memref<16x8x8xf32, #tpu.memory_space<vmem>>, vector<1x8x8xf32>
    %189 = vector.shape_cast %188 : vector<1x8x8xf32> to vector<8x8xf32>
    %cst_84 = arith.constant dense<0.000000e+00> : vector<8x128xf32>
    %190 = tpu.matmul %189, %187, %cst_84 {dimension_numbers = #tpu.dot_dimension_numbers<[1], [0], [0], [1], [0, 0, 1, 1], [], []>} : vector<8x8xf32>, vector<8x128xf32>, vector<8x128xf32> -> vector<8x128xf32>
    %191 = arith.addf %183, %190 : vector<8x128xf32>
    %c119_i32_85 = arith.constant 119 : i32
    %192 = tpu.dynamic_rotate %74 by %c119_i32_85 dim 1 : vector<8x128xf32>, i32 -> vector<8x128xf32>
    %193 = vector.extract_strided_slice %0 {offsets = [7, 0], sizes = [1, 128], strides = [1, 1]} : vector<8x128xf32> to vector<1x128xf32>
    %194 = vector.broadcast %193 : vector<1x128xf32> to vector<8x128xf32>
    %195 = arith.mulf %192, %194 : vector<8x128xf32>
    %c15 = arith.constant 15 : index
    %c0_86 = arith.constant 0 : index
    %c0_87 = arith.constant 0 : index
    %196 = vector.load %arg5[%c15, %c0_86, %c0_87] : memref<16x8x8xf32, #tpu.memory_space<vmem>>, vector<1x8x8xf32>
    %197 = vector.shape_cast %196 : vector<1x8x8xf32> to vector<8x8xf32>
    %cst_88 = arith.constant dense<0.000000e+00> : vector<8x128xf32>
    %198 = tpu.matmul %197, %195, %cst_88 {dimension_numbers = #tpu.dot_dimension_numbers<[1], [0], [0], [1], [0, 0, 1, 1], [], []>} : vector<8x8xf32>, vector<8x128xf32>, vector<8x128xf32> -> vector<8x128xf32>
    %199 = arith.addf %191, %198 : vector<8x128xf32>
    %c0_89 = arith.constant 0 : index
    %c0_90 = arith.constant 0 : index
    %200 = vector.load %arg8[%c0_89, %c0_90] : memref<8x128xf32, #tpu.memory_space<vmem>>, vector<8x128xf32>
    tpu.vector_store %arg8[%c0_89, %c0_90], %199 {strides = array<i32>} : memref<8x128xf32, #tpu.memory_space<vmem>>, vector<8x128xf32>,
    return
  }
  func.func @transform_0(%arg0: i32) -> (i32, i32, i32) {
    %c0_i32 = arith.constant 0 : i32
    %c0_i32_0 = arith.constant 0 : i32
    %c0_i32_1 = arith.constant 0 : i32
    return %c0_i32, %c0_i32_0, %arg0 : i32, i32, i32
  }
  func.func @transform_1(%arg0: i32) -> (i32, i32) {
    %c0_i32 = arith.constant 0 : i32
    %c0_i32_0 = arith.constant 0 : i32
    %c0_i32_1 = arith.constant 0 : i32
    return %c0_i32, %c0_i32_0 : i32, i32
  }
  func.func @transform_2(%arg0: i32) -> (i32, i32) {
    %c0_i32 = arith.constant 0 : i32
    %c0_i32_0 = arith.constant 0 : i32
    %c0_i32_1 = arith.constant 0 : i32
    return %c0_i32, %c0_i32_0 : i32, i32
  }
  func.func @transform_3(%arg0: i32) -> (i32, i32) {
    %c0_i32 = arith.constant 0 : i32
    %c0_i32_0 = arith.constant 0 : i32
    %c0_i32_1 = arith.constant 0 : i32
    return %c0_i32, %c0_i32_0 : i32, i32
  }
  func.func @transform_4(%arg0: i32) -> (i32, i32, i32) {
    %c0_i32 = arith.constant 0 : i32
    %c0_i32_0 = arith.constant 0 : i32
    %c0_i32_1 = arith.constant 0 : i32
    %c0_i32_2 = arith.constant 0 : i32
    return %c0_i32, %c0_i32_0, %c0_i32_1 : i32, i32, i32
  }
  func.func @transform_5(%arg0: i32) -> (i32, i32) {
    %c0_i32 = arith.constant 0 : i32
    %c0_i32_0 = arith.constant 0 : i32
    %c0_i32_1 = arith.constant 0 : i32
    return %c0_i32, %c0_i32_0 : i32, i32
  }
  func.func @transform_6(%arg0: i32) -> (i32, i32) {
    %c0_i32 = arith.constant 0 : i32
    %c0_i32_0 = arith.constant 0 : i32
    %c0_i32_1 = arith.constant 0 : i32
    return %c0_i32, %c0_i32_0 : i32, i32
  }
  func.func @transform_7(%arg0: i32) -> (i32, i32) {
    %c0_i32 = arith.constant 0 : i32
    %c0_i32_0 = arith.constant 0 : i32
    return %c0_i32, %arg0 : i32, i32
  }
}

</mosaic_0001>

<bundles_post_ra>
// kernel: tpu_custom_call.1
= control target key start
LH: loop header
LB: loop body
LE: loop exit
PB: predicated region body
PF: predicated region fallthrough
CT: control target
= control target key end

     0   :  { %12 = vsyncpa [#allocation4], 0  ;;  %s2736_s0 = inlined_call_operand.vmem [shape: f32[4,8,256], index: 0, kind: input, shape index: {}]   ;;  %s2737_s1 = inlined_call_operand.vmem [shape: f32[8,128], index: 1, kind: input, shape index: {}]   ;;  %s2738_s2 = inlined_call_operand.vmem [shape: f32[8,72], index: 2, kind: input, shape index: {}]   ;;  %s2739_s3 = inlined_call_operand.vmem [shape: f32[8,1], index: 3, kind: input, shape index: {}]   ;;  %s2740_s4 = inlined_call_operand.vmem [shape: f32[16,8,8], index: 4, kind: input, shape index: {}]   ;;  %s2741_s5 = inlined_call_operand.vmem [shape: f32[8,8], index: 5, kind: input, shape index: {}]   ;;  %s2742_s6 = inlined_call_operand.vmem [shape: f32[8,1], index: 6, kind: input, shape index: {}]   ;;  %s2743_s7 = inlined_call_operand.hbm [shape: f32[8,256], index: 7, kind: output, shape index: {}]  }
   0x1   :  { %14 = vsyncpa [#allocation4 + $0x1], 0  ;;  %s2371_s24 = smov 0   ;;  %s2373_s25 = smov 0  }
   0x2   :  { %s2375_s26 = smov 0   ;;  %s2377_s27 = smov 0  }
   0x3 LB: > { %s1971_s28 = sadd.s32 4294967295, %s2317_s27   ;;  %s1972_s29 = sadd.s32 4294967294, %s2317_s27   ;;  %s2317_s27 = sphi %s2377_s27, %s2749_s27   ;;  %s2313_s26 = sphi %s2375_s26, %s2748_s26   ;;  %s2309_s25 = sphi %s2373_s25, %s2747_s25   ;;  %s2305_s24 = sphi %s2371_s24, %s2746_s24  }
   0x4   : > { %s2394_s30 = sadd.s32 1, %s2317_s27   ;;  %s27_s8 = sadd.s32 1, %s2313_s26 }
   0x5   : > { %s24_s9 = ssub.s32 %s2317_s27, %s2394_s30  ;;  %p34_p0 = scmp.ne.s32.totalorder %s2313_s26, %s2309_s25 }
   0x6   : > { %p25_p1 = scmp.eq.s32.totalorder %s24_s9, 0  ;;  %p35_p2 = scmp.eq.s32.totalorder %s2317_s27, 0 }
   0x7   : > { %p190_p3 = scmp.eq.s32.totalorder %s1971_s28, 1  ;;  %p195_p4 = scmp.ne.s32.totalorder %s2309_s25, %s2305_s24 }
   0x8   : > { %s2407_s10 = scalar_select %p25_p1, %s2313_s26, %s27_s8  }
   0x9   : > { %p36_p5 = por %p35_p2, %p34_p0  ;;  %p2409_p6 = por %p190_p3, %p34_p0 }
   0xa   : > { %p196_p7 = scmp.eq.s32.totalorder %s1972_s29, 1  ;;  %p1974_p9 = scmp.ge.s32.totalorder %s2317_s27, 2 }
   0xc   : > { %p2413_p8 = por %p196_p7, %p195_p4  ;;  %230 = sbr.rel (%p1974_p9) target bundleno = 26 (0x1a), region = 40 }
  0x13   : > { %233 = sbr.rel (!%p36_p5) target bundleno = 26 (0x1a), region = 44  ;;  %s235_s13 = sand.u32 (%p36_p5), 1, %s2313_s26  }
  0x14   : > { %s1976_s14 = sshll.u32 (%p36_p5), %s2317_s27, 3  ;;  %s1975_s15 = sshll.u32 (%p36_p5), %s235_s13, 5 }
  0x15   : > { %s239_s18 = scalar_lea.vmem (%p36_p5), %s2736_s0, %s1976_s14  ;;  %s237_s19 = scalar_lea.vmem (%p36_p5), [#allocation2], %s1975_s15 }
  0x16   : > { %v273_v0 = vld [vmem:[%s239_s18] sm:$0xff] (%p36_p5)  ;;  %v275_v1 = vld [vmem:[%s239_s18 + $0x10] sm:$0xff] (%p36_p5) }
  0x17   : > { %v277_v2 = vld [vmem:[%s239_s18 + $0x20] sm:$0xff] (%p36_p5)  ;;  %274 = vst [vmem:[%s237_s19] sm:$0xff] (%p36_p5), %v273_v0  ;;  %276 = vst [vmem:[%s237_s19 + $0x8] sm:$0xff] (%p36_p5), %v275_v1  ;;  %v279_v3 = vld [vmem:[%s239_s18 + $0x30] sm:$0xff] (%p36_p5) }
  0x18   : > { %278 = vst [vmem:[%s237_s19 + $0x10] sm:$0xff] (%p36_p5), %v277_v2  ;;  %280 = vst [vmem:[%s237_s19 + $0x18] sm:$0xff] (%p36_p5), %v279_v3 }
  0x1a PF: > { %p1977_p10 = scmp.ge.s32.totalorder %s2317_s27, 1  ;;  %p285_p11 = scmp.lt.s32.totalorder %s2317_s27, 3 }
  0x1c   : > { %p286_p12 = pnand %p1977_p10, %p285_p11 }
  0x1d   : > { %s2428_s20 = sand.u32 (!%p286_p12), 1, %s2309_s25   ;;  %s2319_s23 = smov (!%p286_p12), 9   ;;  %v2324_v8 = vmov (!%p286_p12), 0.0   ;;  %v400_v9 = vld [vmem:[%s2739_s3] sm:$0xff] (!%p286_p12)  ;;  %v2328_v10 = vmov (!%p286_p12), 0   ;;  %vm2329_vm0 = vmmov (!%p286_p12), 0   ;;  %v333_v11 = vlaneseq (!%p286_p12) }
  0x1e   : > { %289 = sbr.rel (%p286_p12) target bundleno = 832 (0x340), region = 82  ;;  %s1978_s21 = sshll.u32 (!%p286_p12), %s2428_s20, 5  ;;  %474 = vmatprep.mubr.f32.mxu1 (!%p286_p12), %v2324_v8  ;;  %2075 = vmatprep.subr.mxu0 (!%p286_p12), %v2324_v8  ;;  %v2477_v15 = vld [vmem:[%s2737_s1] sm:$0xff] (!%p286_p12)  ;;  %vm406_vm1 = vcmask (!%p286_p12), 588800   ;;  %vm567_vm2 = vcmask (!%p286_p12), 64512  }
  0x1f   : > { %s294_s22 = scalar_lea.vmem (!%p286_p12), [#allocation2], %s1978_s21  ;;  %s2320_s29 = smov (!%p286_p12), 8   ;;  %2254 = vset.pattern.permute.xlu0 (!%p286_p12), %v2328_v10  ;;  %2077 = vmatprep.mubr.msk.f32.mxu0 (!%p286_p12), %vm2329_vm0, %v2324_v8  ;;  %v2470_v12 = vshrl.u32 (!%p286_p12), %v333_v11, 7  ;;  %v399_v50 = vld [vmem:[%s2738_s2] sm:$0xff] (!%p286_p12) }
  0x20   : > { %v2431_v4 = vld [vmem:[%s294_s22 + $0x18] sm:$0xff] (!%p286_p12)  ;;  %v2433_v5 = vld [vmem:[%s294_s22 + $0x10] sm:$0xff] (!%p286_p12)  ;;  %s2321_s8 = smov (!%p286_p12), 7   ;;  %v2443_v6 = vld [vmem:[%s294_s22 + $0x8] sm:$0xff] (!%p286_p12)  ;;  %s2322_s9 = smov (!%p286_p12), 1  }
  0x21   : > { %361 = vrot.lane.b32.xlu1 (!%p286_p12), %v2431_v4, %s2319_s23  ;;  %351 = vrot.lane.b32.xlu0 (!%p286_p12), %v2433_v5, %s2320_s29  ;;  %v2445_v7 = vld [vmem:[%s294_s22] sm:$0xff] (!%p286_p12)  ;;  %s2323_s13 = smov (!%p286_p12), 127   ;;  %s2325_s14 = smov (!%p286_p12), 120   ;;  %v365_v13 = vsub.s32 (!%p286_p12), 0, %v2470_v12  ;;  %v355_v14 = vsub.s32 (!%p286_p12), 1, %v2470_v12  ;;  %v372_v16 = vsub.s32 (!%p286_p12), 2, %v2470_v12  ;;  %v2152_v44 = vpack.c.bf16 (!%p286_p12), %v2431_v4, %v2433_v5 }
  0x22   : > { %s2326_s15 = smov (!%p286_p12), 121   ;;  %s2327_s16 = smov (!%p286_p12), 119   ;;  %v335_v22 = vsub.s32 (!%p286_p12), 3, %v2470_v12  ;;  %v342_v23 = vsub.s32 (!%p286_p12), 4, %v2470_v12  ;;  %v2150_v43 = vpack.c.bf16 (!%p286_p12), %v2443_v6, %v2445_v7  ;;  %v379_v48 = vsub.s32 (!%p286_p12), 6, %v2470_v12 }
  0x23   : > { %v2481_v17 = vrot.slane (!%p286_p12), %v2477_v15, %v365_v13  ;;  %v2484_v19 = vrot.slane (!%p286_p12), %v2477_v15, %v355_v14  ;;  %v2487_v21 = vrot.slane (!%p286_p12), %v2477_v15, %v372_v16  ;;  %v389_v51 = vsub.s32 (!%p286_p12), 5, %v2470_v12  ;;  %s1894_s17 = scalar_lea.sflag (!%p286_p12), [#allocation4], %s2428_s20 }
  0x24   : > { %v2496_v30 = vrot.slane (!%p286_p12), %v2477_v15, %v335_v22  ;;  %v2499_v31 = vrot.slane (!%p286_p12), %v2477_v15, %v342_v23  ;;  %v2518_v52 = vrot.slane (!%p286_p12), %v2477_v15, %v379_v48  ;;  %v396_v60 = vsub.s32 (!%p286_p12), 7, %v2470_v12 }
  0x25   : > { %358 = vrot.lane.b32.xlu0 %v2431_v4, %s2320_s29  ;;  %368 = vrot.lane.b32.xlu1 %v2433_v5, %s2321_s8  ;;  %v2525_v56 = vrot.slane %v2477_v15, %v389_v51  ;;  %v556_v62 = vadd.f32 %v2443_v6, %v2445_v7 }
  0x26   : > { %v2537_v2 = vrot.slane %v2477_v15, %v396_v60 }
  0x29   : > { %331 = vrot.lane.b32.xlu0 %v2443_v6, %s2322_s9  ;;  %338 = vrot.lane.b32.xlu1 %v2445_v7, %s2323_s13 }
  0x2d   : > { %345 = vrot.lane.b32.xlu0 %v2431_v4, %s2322_s9  ;;  %348 = vrot.lane.b32.xlu1 %v2433_v5, %s2323_s13 }
  0x31   : > { %375 = vrot.lane.b32.xlu0 %v2445_v7, %s2325_s14  ;;  %382 = vrot.lane.b32.xlu1 %v2443_v6, %s2325_s14 }
  0x35   : > { %385 = vrot.lane.b32.xlu0 %v2443_v6, %s2326_s15  ;;  %392 = vrot.lane.b32.xlu1 %v2445_v7, %s2327_s16 }
  0x39   : > { %403 = vperm.xlu0 %2254, %v400_v9   ;;  %v557_v9 = vadd.f32 %v2433_v5, %v556_v62 }
  0x93   : > { %v362_v18 = vpop.permute.xlu1 %361  ;;  %v352_v20 = vpop.permute.xlu0 %351 }
  0x94   : > { %v367_v24 = vmul.f32 %v2481_v17, %v362_v18  ;;  %v357_v25 = vmul.f32 %v2484_v19, %v352_v20  ;;  %v641_v18 = vld [vmem:[%s2740_s4] sm:$0xff] }
  0x96   : > { %v2142_v35 = vpack.c.bf16 %v357_v25, %v367_v24 }
  0x97   : > { %v359_v26 = vpop.permute.xlu0 %358  ;;  %v369_v27 = vpop.permute.xlu1 %368 }
  0x98   : > { %v360_v28 = vmul.f32 %v359_v26, %v2484_v19  ;;  %v374_v29 = vmul.f32 %v2487_v21, %v369_v27  ;;  %v1987_v27 = vld [vmem:[%s2740_s4 + $0x8] sm:$0xff] }
  0x9a   : > { %v2144_v32 = vpack.c.bf16 %v2445_v7, %v374_v29  ;;  %v2140_v33 = vpack.c.bf16 %v360_v28, %v357_v25  ;;  %v561_v29 = vld [vmem:[%s2742_s6] sm:$0xff] }
  0x9b   : > { %v332_v34 = vpop.permute.xlu0 %331  ;;  %v339_v36 = vpop.permute.xlu1 %338 }
  0x9c   : > { %v337_v37 = vmul.f32 %v2496_v30, %v332_v34  ;;  %2141 = vmatprep.subr.bf16.mxu1 %v2140_v33  ;;  %v344_v38 = vmul.f32 %v2499_v31, %v339_v36  ;;  %v1991_v34 = vld [vmem:[%s2740_s4 + $0x18] sm:$0xff]  ;;  %v1995_v36 = vld [vmem:[%s2740_s4 + $0x28] sm:$0xff] }
  0x9d   : > { %2143 = vmatpush1.bf16.msra.mxu1 %v2142_v35  ;;  %v1993_v35 = vld [vmem:[%s2740_s4 + $0x20] sm:$0xff] }
  0x9e   : > { %v2146_v39 = vpack.c.bf16 %v337_v37, %v360_v28  ;;  %v2148_v40 = vpack.c.bf16 %v344_v38, %v2443_v6  ;;  %2145 = vmatprep.subr.bf16.mxu1 %v2144_v32  ;;  %v2158_v53 = vpack.c.bf16 %v2445_v7, %v337_v37  ;;  %v2160_v55 = vpack.c.bf16 %v2433_v5, %v344_v38 }
  0x9f   : > { %v346_v41 = vpop.permute.xlu0 %345  ;;  %v349_v45 = vpop.permute.xlu1 %348 }
  0xa0   : > { %v347_v42 = vmul.f32 %v346_v41, %v2496_v30  ;;  %v350_v47 = vmul.f32 %v349_v45, %v2499_v31  ;;  %v1997_v41 = vld [vmem:[%s2740_s4 + $0x30] sm:$0xff] }
  0xa1   : > { %2147 = vmatpush1.bf16.msra.mxu1 %v2146_v39 }
  0xa2   : > { %2149 = vmatprep.subr.bf16.mxu1 %v2148_v40  ;;  %v2154_v46 = vpack.c.bf16 %v2433_v5, %v347_v42  ;;  %v2162_v61 = vpack.c.bf16 %v347_v42, %v2443_v6  ;;  %v2164_v63 = vpack.c.bf16 %v350_v47, %v2431_v4  ;;  %v558_v6 = vadd.f32 %v2431_v4, %v557_v9  ;;  %v560_v5 = vld [vmem:[%s2741_s5] sm:$0xff] }
  0xa3   : > { %v376_v49 = vpop.permute.xlu0 %375  ;;  %v383_v54 = vpop.permute.xlu1 %382 }
  0xa4   : > { %v381_v57 = vmul.f32 %v2518_v52, %v376_v49  ;;  %v384_v59 = vmul.f32 %v383_v54, %v2518_v52  ;;  %v559_v7 = vmul.f32 0.25, %v558_v6 }
  0xa5   : > { %2151 = vmatpush1.bf16.msra.mxu1 %v2150_v43 }
  0xa6   : > { %2153 = vmatprep.subr.bf16.mxu1 %v2152_v44  ;;  %v2168_v1 = vpack.c.bf16 %v384_v59, %v381_v57 }
  0xa7   : > { %v386_v58 = vpop.permute.xlu0 %385  ;;  %v393_v3 = vpop.permute.xlu1 %392 }
  0xa8   : > { %v391_v0 = vmul.f32 %v2525_v56, %v386_v58  ;;  %v398_v11 = vmul.f32 %v2537_v2, %v393_v3 }
  0xa9   : > { %2155 = vmatpush1.bf16.msra.mxu1 %v2154_v46  ;;  %v1999_v46 = vld [vmem:[%s2740_s4 + $0x38] sm:$0xff] }
  0xaa   : > { %426 = vmatprep.subr.mxu1 %v350_v47  ;;  %v2170_v10 = vpack.c.bf16 %v381_v57, %v391_v0  ;;  %v2007_v57 = vld [vmem:[%s2740_s4 + $0x58] sm:$0xff] }
  0xad   : > { %427 = vmatpush1.msra.mxu1 %v2431_v4 }
  0xae   : > { %1983 = vmatmul.mubr.msk.f32.vlgmr.msra.gmra.mrb[0].mxu1 %vm406_vm1, %v399_v50  ;;  %2157 = vmatprep.subr.bf16.mxu1 %v2150_v43 }
  0xaf   : > { %2159 = vmatpush1.bf16.msra.mxu1 %v2158_v53  ;;  %545 = vmatprep.mubr.f32.mxu1 %v2324_v8  ;;  %v2003_v53 = vld [vmem:[%s2740_s4 + $0x48] sm:$0xff] }
  0xb0   : > { %2161 = vmatprep.subr.bf16.mxu1 %v2160_v55 }
  0xb3   : > { %2163 = vmatpush1.bf16.msra.mxu1 %v2162_v61  ;;  %v2011_v61 = vld [vmem:[%s2740_s4 + $0x68] sm:$0xff] }
  0xb4   : > { %2165 = vmatprep.subr.bf16.mxu1 %v2164_v63  ;;  %v2013_v63 = vld [vmem:[%s2740_s4 + $0x70] sm:$0xff] }
  0xb7   : > { %2167 = vmatpush1.bf16.msra.mxu1 %v2152_v44 }
  0xb8   : > { %2169 = vmatprep.subr.bf16.mxu1 %v2168_v1  ;;  %v404_v4 = vpop.permute.xlu0 %403 }
  0xbb   : > { %2171 = vmatpush1.bf16.msra.mxu1 %v2170_v10 }
  0xbc   : > { %497 = vmatprep.subr.mxu1 %v398_v11 }
  0xbf   : > { %498 = vmatpush1.msra.mxu1 %v384_v59 }
  0xc0   : > { %1984 = vmatmul.mubr.msk.f32.vlgmr.msra.gmra.mrb[2].mxu1 %vm406_vm1, %v399_v50  ;;  %2055 = vmatprep.subr.mxu1 %v2324_v8  ;;  %v2001_v50 = vld [vmem:[%s2740_s4 + $0x40] sm:$0xff] }
  0xc1   : > { %2056 = vmatpush3.msra.mxu1 %v559_v7  ;;  %2057 = vmatprep.mubr.msk.f32.mxu1 %vm2329_vm0, %v2324_v8 }
  0xc2   : > { %2060 = vmatprep.subr.mxu1 %v2324_v8 }
  0xc4   : > { %2058 = vmatmul.mubr.msk.f32.vlgmr.msra.gmra.mrb[4].mxu1 %vm567_vm2, %v560_v5 }
  0xc5   : > { %2062 = vmatprep.mubr.msk.f32.mxu1 %vm2329_vm0, %v2324_v8 }
 0x181   : > { %v476_v12 = vpop.f32.mrb[0].mxu1 }
 0x182   : > { %v477_v13 = vadd.f32 %v476_v12, %v404_v4  ;;  %v478_v14 = vpop.f32.mrb[1].mxu1 }
 0x183   : > { %v479_v15 = vadd.f32 %v478_v14, %v404_v4 }
 0x184   : > { %v552_v16 = vmax.f32 %v477_v13, 0.0 }
 0x185   : > { %v553_v20 = vmax.f32 %v479_v15, 0.0 }
 0x186   : > { %871 = vrot.lane.b32.xlu1 %v552_v16, %s2323_s13  ;;  %2061 = vmatpush3.msra.mxu1 %v552_v16 }
 0x187   : > { %2065 = vmatprep.subr.mxu1 %v2324_v8  ;;  %2063 = vmatmul.mubr.msk.f32.vlgmr.msra.gmra.mrb[4].mxu1 %vm567_vm2, %v641_v18 }
 0x188   : > { %2066 = vmatpush3.msra.mxu1 %v553_v20  ;;  %2067 = vmatprep.mubr.msk.f32.mxu1 %vm2329_vm0, %v2324_v8 }
 0x189   : > { %2070 = vmatprep.subr.mxu1 %v2324_v8 }
 0x18f   : > { %2068 = vmatmul.mubr.msk.f32.vlgmr.msra.gmra.mrb[4].mxu1 %vm567_vm2, %v1987_v27 }
 0x190   : > { %2072 = vmatprep.mubr.msk.f32.mxu1 %vm2329_vm0, %v2324_v8 }
 0x193   : > { %v547_v22 = vpop.f32.mrb[2].mxu1 }
 0x194   : > { %v548_v23 = vadd.f32 %v547_v22, %v404_v4  ;;  %v549_v24 = vpop.f32.mrb[3].mxu1 }
 0x195   : > { %v550_v25 = vadd.f32 %v549_v24, %v404_v4 }
 0x196   : > { %v554_v26 = vmax.f32 %v548_v23, 0.0 }
 0x197   : > { %v555_v28 = vmax.f32 %v550_v25, 0.0 }
 0x198   : > { %1181 = vrot.lane.b32.xlu0 %v554_v26, %s2323_s13 }
 0x199   : > { %1102 = vrot.lane.b32.xlu1 %v555_v28, %s2322_s9 }
 0x19c   : > { %1339 = vrot.lane.b32.xlu0 %v555_v28, %s2320_s29 }
 0x19d   : > { %1260 = vrot.lane.b32.xlu1 %v554_v26, %s2320_s29 }
 0x1a0   : > { %1497 = vrot.lane.b32.xlu0 %v554_v26, %s2321_s8  ;;  %s1979_s8 = sshll.u32 %s2428_s20, 3 }
 0x1a1   : > { %1418 = vrot.lane.b32.xlu1 %v555_v28, %s2319_s23 }
 0x1a4   : > { %1655 = vrot.lane.b32.xlu0 %v553_v20, %s2325_s14 }
 0x1a5   : > { %1576 = vrot.lane.b32.xlu1 %v552_v16, %s2325_s14  ;;  %s322_s14 = scalar_lea.vmem [#allocation3], %s1979_s8 }
 0x1a8   : > { %792 = vrot.lane.b32.xlu0 %v553_v20, %s2322_s9  ;;  %s2018_s9 = sshll.u32 %s1971_s28, 7  ;;  %s2330_s28 = smov [#allocation3]  }
 0x1a9   : > { %1734 = vrot.lane.b32.xlu1 %v553_v20, %s2326_s15  ;;  %s1907_s15 = sshll.u32 %s322_s14, 4  ;;  %s2692_s22 = scalar_lea.hbm %s2743_s7, %s2018_s9  ;;  %s2694_s15 = int_to_ptr.vmem [resolvable:$true] %s1907_s15 }
 0x1aa   : > { %s2255_s18 = scalar_lea.vmem %s2694_s15, 128  ;;  %s2259_s13 = sshll.u32 %s2330_s28, 4  ;;  %s2260_s13 = int_to_ptr.vmem [resolvable:$false] %s2259_s13 }
 0x1ab   : > { %p2256_p13 = scmp.ne.s32.totalorder %s2694_s15, %s2255_s18  ;;  %s2261_s19 = scalar_lea.vmem %s2260_s13, 256 }
 0x1ac   : > { %564 = vperm.xlu0 %2254, %v561_v29   ;;  %p2262_p2 = scmp.lt.s32.totalorder %s2694_s15, %s2260_s13  ;;  %p2263_p3 = scmp.lt.s32.totalorder %s2261_s19, %s2255_s18 }
 0x1ad   : > { %1813 = vrot.lane.b32.xlu1 %v552_v16, %s2327_s16  ;;  %p2257_p0 = pnand %p2256_p13, %p2409_p6 }
 0x1ae   : > { %p2264_p4 = por %p2263_p3, %p2262_p2 }
 0x1af   : > { %p2258_p1 = pneg %p2257_p0 }
 0x1b1   : > { %p2265_p5 = pnand %p2264_p4, %p2258_p1 }
 0x1f8   : > { %v872_v32 = vpop.permute.xlu1 %871 }
 0x1f9   : > { %v873_v33 = vmul.f32 %v872_v32, %v2499_v31 }
 0x1fb   : > { %2076 = vmatpush3.msra.mxu0 %v873_v33 }
 0x1fc   : > { %2078 = vmatmul.mubr.msk.f32.vlgmr.msra.gmra.mrb[0].mxu0 %vm567_vm2, %v1991_v34  ;;  %2080 = vmatprep.subr.mxu0 %v2324_v8 }
 0x1fd   : > { %2081 = vmatpush3.msra.mxu0 %v554_v26  ;;  %2082 = vmatprep.mubr.msk.f32.mxu0 %vm2329_vm0, %v2324_v8 }
 0x1fe   : > { %2085 = vmatprep.subr.mxu0 %v2324_v8 }
 0x204   : > { %2083 = vmatmul.mubr.msk.f32.vlgmr.msra.gmra.mrb[0].mxu0 %vm567_vm2, %v1993_v35 }
 0x205   : > { %2086 = vmatpush3.msra.mxu0 %v555_v28  ;;  %2087 = vmatprep.mubr.msk.f32.mxu0 %vm2329_vm0, %v2324_v8 }
 0x206   : > { %2090 = vmatprep.subr.mxu0 %v2324_v8 }
 0x20a   : > { %v1182_v37 = vpop.permute.xlu0 %1181 }
 0x20b   : > { %v1103_v38 = vpop.permute.xlu1 %1102  ;;  %v1183_v43 = vmul.f32 %v1182_v37, %v2499_v31  ;;  %v1989_v31 = vld [vmem:[%s2740_s4 + $0x10] sm:$0xff] }
 0x20c   : > { %v1104_v39 = vmul.f32 %v1103_v38, %v2496_v30  ;;  %2088 = vmatmul.mubr.msk.f32.vlgmr.msra.gmra.mrb[0].mxu0 %vm567_vm2, %v1995_v36 }
 0x20d   : > { %2092 = vmatprep.mubr.msk.f32.mxu0 %vm2329_vm0, %v2324_v8 }
 0x20e   : > { %v1340_v40 = vpop.permute.xlu0 %1339  ;;  %2091 = vmatpush3.msra.mxu0 %v1104_v39 }
 0x20f   : > { %2095 = vmatprep.subr.mxu0 %v2324_v8  ;;  %v1261_v45 = vpop.permute.xlu1 %1260 }
 0x210   : > { %v1262_v48 = vmul.f32 %v1261_v45, %v2484_v19 }
 0x212   : > { %v1498_v42 = vpop.permute.xlu0 %1497 }
 0x213   : > { %v1419_v51 = vpop.permute.xlu1 %1418  ;;  %v1499_v55 = vmul.f32 %v1498_v42, %v2487_v21  ;;  %v2009_v21 = vld [vmem:[%s2740_s4 + $0x60] sm:$0xff] }
 0x214   : > { %2093 = vmatmul.mubr.msk.f32.vlgmr.msra.gmra.mrb[0].mxu0 %vm567_vm2, %v1997_v41  ;;  %v1420_v54 = vmul.f32 %v1419_v51, %v2481_v17 }
 0x215   : > { %2096 = vmatpush3.msra.mxu0 %v1183_v43  ;;  %2097 = vmatprep.mubr.msk.f32.mxu0 %vm2329_vm0, %v2324_v8 }
 0x216   : > { %v1656_v44 = vpop.permute.xlu0 %1655  ;;  %2100 = vmatprep.subr.mxu0 %v2324_v8 }
 0x217   : > { %v1577_v17 = vpop.permute.xlu1 %1576  ;;  %v1657_v59 = vmul.f32 %v1656_v44, %v2518_v52 }
 0x218   : > { %v1578_v58 = vmul.f32 %v1577_v17, %v2518_v52 }
 0x21a   : > { %v793_v47 = vpop.permute.xlu0 %792 }
 0x21b   : > { %v794_v49 = vmul.f32 %v793_v47, %v2496_v30  ;;  %v1341_v30 = vmul.f32 %v1340_v40, %v2484_v19  ;;  %v2005_v19 = vld [vmem:[%s2740_s4 + $0x50] sm:$0xff]  ;;  %v1735_v60 = vpop.permute.xlu1 %1734 }
 0x21c   : > { %2098 = vmatmul.mubr.msk.f32.vlgmr.msra.gmra.mrb[0].mxu0 %vm567_vm2, %v1999_v46  ;;  %v1736_v62 = vmul.f32 %v1735_v60, %v2525_v56  ;;  %v2015_v56 = vld [vmem:[%s2740_s4 + $0x78] sm:$0xff] }
 0x21d   : > { %2101 = vmatpush3.msra.mxu0 %v1262_v48  ;;  %2071 = vmatpush3.msra.mxu1 %v794_v49 }
 0x21e   : > { %2073 = vmatmul.mubr.msk.f32.vlgmr.msra.gmra.mrb[4].mxu1 %vm567_vm2, %v1989_v31  ;;  %2102 = vmatprep.mubr.msk.f32.mxu0 %vm2329_vm0, %v2324_v8 }
 0x21f   : > { %2105 = vmatprep.subr.mxu0 %v2324_v8  ;;  %v1814_v52 = vpop.permute.xlu1 %1813 }
 0x220   : > { %v1815_v0 = vmul.f32 %v1814_v52, %v2537_v2 }
 0x224   : > { %2103 = vmatmul.mubr.msk.f32.vlgmr.msra.gmra.mrb[0].mxu0 %vm567_vm2, %v2001_v50 }
 0x225   : > { %2106 = vmatpush3.msra.mxu0 %v1341_v30  ;;  %2107 = vmatprep.mubr.msk.f32.mxu0 %vm2329_vm0, %v2324_v8 }
 0x226   : > { %2110 = vmatprep.subr.mxu0 %v2324_v8 }
 0x22b   : > { %v565_v9 = vpop.permute.xlu0 %564 }
 0x22c   : > { %2108 = vmatmul.mubr.msk.f32.vlgmr.msra.gmra.mrb[0].mxu0 %vm567_vm2, %v2003_v53 }
 0x22d   : > { %2111 = vmatpush3.msra.mxu0 %v1420_v54  ;;  %2112 = vmatprep.mubr.msk.f32.mxu0 %vm2329_vm0, %v2324_v8 }
 0x22e   : > { %2115 = vmatprep.subr.mxu0 %v2324_v8 }
 0x234   : > { %2113 = vmatmul.mubr.msk.f32.vlgmr.msra.gmra.mrb[0].mxu0 %vm567_vm2, %v2005_v19 }
 0x235   : > { %2116 = vmatpush3.msra.mxu0 %v1499_v55  ;;  %2117 = vmatprep.mubr.msk.f32.mxu0 %vm2329_vm0, %v2324_v8 }
 0x236   : > { %2120 = vmatprep.subr.mxu0 %v2324_v8 }
 0x23c   : > { %2118 = vmatmul.mubr.msk.f32.vlgmr.msra.gmra.mrb[0].mxu0 %vm567_vm2, %v2007_v57 }
 0x23d   : > { %2121 = vmatpush3.msra.mxu0 %v1578_v58  ;;  %2122 = vmatprep.mubr.msk.f32.mxu0 %vm2329_vm0, %v2324_v8 }
 0x23e   : > { %2125 = vmatprep.subr.mxu0 %v2324_v8 }
 0x244   : > { %2123 = vmatmul.mubr.msk.f32.vlgmr.msra.gmra.mrb[0].mxu0 %vm567_vm2, %v2009_v21 }
 0x245   : > { %2126 = vmatpush3.msra.mxu0 %v1657_v59  ;;  %2127 = vmatprep.mubr.msk.f32.mxu0 %vm2329_vm0, %v2324_v8 }
 0x246   : > { %2130 = vmatprep.subr.mxu0 %v2324_v8 }
 0x24c   : > { %2128 = vmatmul.mubr.msk.f32.vlgmr.msra.gmra.mrb[0].mxu0 %vm567_vm2, %v2011_v61 }
 0x24d   : > { %2131 = vmatpush3.msra.mxu0 %v1736_v62  ;;  %2132 = vmatprep.mubr.msk.f32.mxu0 %vm2329_vm0, %v2324_v8 }
 0x24e   : > { %2135 = vmatprep.subr.mxu0 %v2324_v8 }
 0x254   : > { %2133 = vmatmul.mubr.msk.f32.vlgmr.msra.gmra.mrb[0].mxu0 %vm567_vm2, %v2013_v63 }
 0x255   : > { %2136 = vmatpush3.msra.mxu0 %v1815_v0  ;;  %2137 = vmatprep.mubr.msk.f32.mxu0 %vm2329_vm0, %v2324_v8 }
 0x25c   : > { %2138 = vmatmul.mubr.msk.f32.vlgmr.msra.gmra.mrb[0].mxu0 %vm567_vm2, %v2015_v56 }
 0x2f1   : > { %v866_v1 = vpop.f32.mrb[4].mxu1 }
 0x2f2   : > { %v2074_v3 = vpop.f32.mrb[5].mxu1  ;;  %v2172_v2 = vadd.f32 %v866_v1, %v565_v9 }
 0x32f   : > { %v1887_v10 = vpop.f32.mrb[0].mxu0 }
 0x330   : > { %v2173_v11 = vadd.f32 %v2172_v2, %v1887_v10  ;;  %v2139_v8 = vpop.f32.mrb[1].mxu0 }
 0x332   : > { %1892 = vst [vmem:[%s322_s14] sm:$0xff] %v2173_v11 }
 0x333   : > { %2268 = shalt.err (!%p2265_p5)
}
 0x334   : > { %s2269_s20 = scalar_lea.hbm %s2692_s22, 128  ;;  %s2273_s8 = scalar_lea.hbm %s2743_s7, 256 }
 0x335   : > { %p2270_p7 = scmp.ne.s32.totalorder %s2692_s22, %s2269_s20  ;;  %p2274_p12 = scmp.lt.u32.totalorder %s2692_s22, %s2743_s7 }
 0x336   : > { %p2275_p13 = scmp.lt.u32.totalorder %s2273_s8, %s2269_s20  ;;  %p2277_p1 = scmp.lt.u32.totalorder %s2269_s20, %s2692_s22 }
 0x337   : > { %p2271_p10 = pnand %p2270_p7, %p2409_p6 }
 0x338   : > { %p2276_p0 = por %p2275_p13, %p2274_p12 }
 0x339   : > { %p2272_p11 = pneg %p2271_p10 }
 0x33a   : > { %p2278_p2 = por %p2277_p1, %p2276_p0 }
 0x33c   : > { %p2279_p3 = pnand %p2278_p2, %p2272_p11 }
 0x33e   : > { %2282 = shalt.err (!%p2279_p3)
}
 0x33f   : > { %2204 = dma.vmem_to_hbm [thread:$0]  (%p2409_p6), %s2694_s15, 128, %s2692_s22, %s1894_s17  }
 0x340 PF: > { %s1919_s16 = sand.u32 1, %s2305_s24   ;;  %p2207_p4 = pnand %p1974_p9, %p2413_p8 }
 0x341   : > { %s1920_s21 = scalar_lea.sflag [#allocation4], %s1919_s16 }
 0x342   : > { %2300 = dma.done.wait (!%p2207_p4), %s1920_s21, 128  }
 0x343   : > { %2302 = vsyncadd (!%p2207_p4), %s1920_s21, 4294967168  ;;  %p17_p5 = scmp.ge.s32.totalorder %s2394_s30, 4   ;;  %s2746_s24 = smov %s2309_s25 }
 0x344   : > { %s2747_s25 = smov %s2313_s26  ;;  %s2748_s26 = smov %s2407_s10 }
 0x345   : > { %s2749_s27 = smov %s2394_s30  ;;  %19 = sbr.rel (!%p17_p5) target bundleno = 3 (0x3), region = 144 }
 0x34c   :  { %1925 = vsyncpa [#allocation4], 1 }
 0x34d   :  { %1927 = vsyncpa [#allocation4 + $0x1], 1 }

</bundles_post_ra>
